<compile_context>
chip_gen: v7x
topology: tpu7x:2x2x1
jax: 0.10.0
libtpu: 0.0.40
codegen_flags: <defaults>
</compile_context>

<pallas_src>
import functools

import jax
import jax.numpy as jnp
from jax.experimental import pallas as pl
from jax.experimental.pallas import tpu as pltpu


def _round_up(x, m):
    return ((x + m - 1) // m) * m


def _largest_tile(size, candidates):
    for c in candidates:
        if size % c == 0:
            return c
    return candidates[-1]


# ---------------------------------------------------------------------------
# Kernels
# ---------------------------------------------------------------------------

def _linear_kernel_single_k(x_ref, w_ref, b_ref, o_ref):
    """One (tm, tn) output tile; the full K contraction in a single MXU pass.

    x_ref: (tm, K_pad) bf16
    w_ref: (K_pad, tn) bf16  -- weight already transposed to (K, N)
    b_ref: (1, tn)     f32
    o_ref: (tm, tn)    out dtype
    """
    acc = jnp.dot(x_ref[...], w_ref[...], preferred_element_type=jnp.float32)
    o_ref[...] = (acc + b_ref[...]).astype(o_ref.dtype)


def _linear_kernel_multi_k(x_ref, w_ref, b_ref, o_ref, acc_ref):
    """(tm, tn) output tile; grid axis 2 (K) is the reduction axis.

    x_ref  : (tm, tk) bf16
    w_ref  : (tk, tn) bf16  -- weight already transposed to (K, N)
    b_ref  : (1,  tn) f32   -- resident across the K grid axis
    acc_ref: (tm, tn) f32   -- VMEM accumulator scratch
    """
    k = pl.program_id(2)

    @pl.when(k == 0)
    def _():
        acc_ref[...] = jnp.zeros_like(acc_ref)

    acc_ref[...] += jnp.dot(x_ref[...], w_ref[...],
                            preferred_element_type=jnp.float32)

    @pl.when(k == pl.num_programs(2) - 1)
    def _():
        o_ref[...] = (acc_ref[...] + b_ref[...]).astype(o_ref.dtype)


# ---------------------------------------------------------------------------
# Parameter preparation -- do this ONCE at load time, not per forward call.
# ---------------------------------------------------------------------------

def prepare_linear_params(weight, bias):
    """weight: (out, in) native PyTorch layout; bias: (out,).

    Returns:
      w_kn : (K_pad, N_pad) bf16  -- transposed + bf16-cast + 128-lane padded
      b_row: (1, N_pad)     f32   -- padded bias row
    """
    N, K = weight.shape
    K_pad, N_pad = _round_up(K, 128), _round_up(N, 128)
    w_kn = weight.T.astype(jnp.bfloat16)
    if (K_pad, N_pad) != (K, N):
        w_kn = jnp.pad(w_kn, ((0, K_pad - K), (0, N_pad - N)))
    b_row = bias.astype(jnp.float32)
    if N_pad != N:
        b_row = jnp.pad(b_row, (0, N_pad - N))
    return w_kn, b_row.reshape(1, N_pad)


# ---------------------------------------------------------------------------
# Forward
# ---------------------------------------------------------------------------

@functools.partial(jax.jit, static_argnames=("input_size", "output_size"))
def linear_forward(x, w_kn, b_row, *, input_size, output_size):
    """Equivalent of Linear.forward.

    x     : any shape whose total size is divisible by input_size
    w_kn  : (K_pad, N_pad) bf16 from prepare_linear_params
    b_row : (1, N_pad)     f32  from prepare_linear_params
    returns (M, output_size), M = x.size // input_size
    """
    x2d = x.reshape(-1, input_size)          # torch .view(-1, input_size)
    M = x2d.shape[0]
    K_pad, N_pad = w_kn.shape
    out_dtype = x.dtype

    # ---- tile selection -----------------------------------------------------
    # tm: multiple of 16 (bf16 sublane packing); >=512 for large M so the
    # weight stream stays above the compute-bound arithmetic-intensity
    # threshold on v6e (~680 flops/byte) and v7x (~311).
    if M <= 512:
        tm = _round_up(M, 16)
    else:
        tm = 512
    M_pad = _round_up(M, tm)

    # tn / tk: lane-dense multiples of 128 that divide the padded dims.
    # tk = K_pad (single K pass, no accumulator RMW) whenever it fits VMEM.
    tn = N_pad if N_pad <= 1024 else _largest_tile(N_pad, (1024, 512, 256, 128))
    tk = K_pad if K_pad <= 2048 else _largest_tile(K_pad, (2048, 1024, 512, 256, 128))

    # v7x has 2 TensorCores sharded over the "parallel" axes: keep >=2 blocks.
    if M_pad // tm == 1 and N_pad // tn == 1 and N_pad % 256 == 0:
        tn = N_pad // 2

    n_k = K_pad // tk

    # ---- activation prep (weight/bias were prepared once at load) -----------
    x_bf = x2d.astype(jnp.bfloat16)
    if (M_pad, K_pad) != (M, input_size):
        x_bf = jnp.pad(x_bf, ((0, M_pad - M), (0, K_pad - input_size)))

    # ---- VMEM budget: double-buffered in/out tiles + accumulator ------------
    out_bytes = jnp.dtype(out_dtype).itemsize
    vmem_bytes = (2 * (tm * tk * 2 + tk * tn * 2 + tn * 4 + tm * tn * out_bytes)
                  + (tm * tn * 4 if n_k > 1 else 0))
    vmem_limit = int(min(vmem_bytes + (8 << 20), 96 << 20))

    if n_k == 1:
        out = pl.pallas_call(
            _linear_kernel_single_k,
            out_shape=jax.ShapeDtypeStruct((M_pad, N_pad), out_dtype),
            grid_spec=pltpu.PrefetchScalarGridSpec(
                num_scalar_prefetch=0,
                grid=(M_pad // tm, N_pad // tn),
                in_specs=[
                    pl.BlockSpec((tm, tk), lambda i, j: (i, 0)),   # x
                    pl.BlockSpec((tk, tn), lambda i, j: (0, j)),   # W (K, N)
                    pl.BlockSpec((1, tn), lambda i, j: (0, j)),    # bias
                ],
                out_specs=pl.BlockSpec((tm, tn), lambda i, j: (i, j)),
            ),
            compiler_params=pltpu.CompilerParams(
                dimension_semantics=("parallel", "parallel"),
                vmem_limit_bytes=vmem_limit,
            ),
        )(x_bf, w_kn, b_row)
    else:
        out = pl.pallas_call(
            _linear_kernel_multi_k,
            out_shape=jax.ShapeDtypeStruct((M_pad, N_pad), out_dtype),
            grid_spec=pltpu.PrefetchScalarGridSpec(
                num_scalar_prefetch=0,
                grid=(M_pad // tm, N_pad // tn, n_k),
                in_specs=[
                    pl.BlockSpec((tm, tk), lambda i, j, k: (i, k)),  # x
                    pl.BlockSpec((tk, tn), lambda i, j, k: (k, j)),  # W (K, N)
                    pl.BlockSpec((1, tn), lambda i, j, k: (0, j)),   # bias
                ],
                out_specs=pl.BlockSpec((tm, tn), lambda i, j, k: (i, j)),
                scratch_shapes=[pltpu.VMEM((tm, tn), jnp.float32)],
            ),
            compiler_params=pltpu.CompilerParams(
                dimension_semantics=("parallel", "parallel", "arbitrary"),
                vmem_limit_bytes=vmem_limit,
            ),
        )(x_bf, w_kn, b_row)

    if (M_pad, N_pad) != (M, output_size):
        out = out[:M, :output_size]
    return out


def init_linear_params(key, input_size, output_size, dtype=jnp.float32):
    """Match torch.nn.Linear default init (uniform +/- 1/sqrt(fan_in))."""
    k_w, k_b = jax.random.split(key)
    bound = 1.0 / (input_size ** 0.5)
    weight = jax.random.uniform(
        k_w, (output_size, input_size), dtype=dtype, minval=-bound, maxval=bound
    )
    bias = jax.random.uniform(
        k_b, (output_size,), dtype=dtype, minval=-bound, maxval=bound
    )
    return weight, bias


if __name__ == "__main__":
    input_size = 32
    output_size = 16
    batch = 2
    seq = 4  # extra leading dim to exercise the view(-1, input_size) flatten

    key = jax.random.PRNGKey(0)
    k_x, k_p = jax.random.split(key)

    x = jax.random.normal(k_x, (batch, seq, input_size), dtype=jnp.float32)
    weight, bias = init_linear_params(k_p, input_size, output_size)

    # Weight transpose + bf16 cast + padding happen ONCE here, not per call.
    w_kn, b_row = prepare_linear_params(weight, bias)

    out = linear_forward(x, w_kn, b_row,
                         input_size=input_size, output_size=output_size)
    out = jax.block_until_ready(out)
    assert out.shape == (batch * seq, output_size)

    # Tight check vs a reference using the same bf16-rounded operands
    # (fp32 accumulation on both sides).
    x2d = x.reshape(-1, input_size)
    ref_bf = (
        x2d.astype(jnp.bfloat16).astype(jnp.float32)
        @ weight.astype(jnp.bfloat16).astype(jnp.float32).T
        + bias
    )
    assert jnp.allclose(out, ref_bf, atol=1e-4, rtol=1e-4)

    # Loose sanity check vs the pure fp32 reference (bf16 input rounding).
    # TODO(synk): add an fp32 precision path if exact fp32 parity is required.
    ref_f32 = x2d @ weight.T + bias
    assert jnp.allclose(out, ref_f32, atol=2e-2, rtol=2e-2)

    print("KERNEL_OK")
</pallas_src>

<mosaic_0001>
module attributes {stable_mosaic.version = 11 : i64} {
  func.func @_linear_kernel_single_k(%arg0: i32, %arg1: i32, %arg2: memref<16x128xbf16, #tpu.memory_space<vmem>>, %arg3: memref<128x128xbf16, #tpu.memory_space<vmem>>, %arg4: memref<1x128xf32, #tpu.memory_space<vmem>>, %arg5: memref<16x128xf32, #tpu.memory_space<vmem>>) attributes {dimension_semantics = [#tpu.dimension_semantics<parallel>, #tpu.dimension_semantics<parallel>], iteration_bounds = array<i64: 1, 1>, scalar_prefetch = 0 : i64, scratch_operands = 0 : i64, tpu.core_type = #tpu.core_type<tc>, window_params = [{transform_indices = @transform_0, window_bounds = array<i64: 16, 128>}, {transform_indices = @transform_1, window_bounds = array<i64: 128, 128>}, {transform_indices = @transform_2, window_bounds = array<i64: 1, 128>}, {transform_indices = @transform_3, window_bounds = array<i64: 16, 128>}]} {
    %c0 = arith.constant 0 : index
    %c0_0 = arith.constant 0 : index
    %0 = vector.load %arg2[%c0, %c0_0] : memref<16x128xbf16, #tpu.memory_space<vmem>>, vector<16x128xbf16>
    %c0_1 = arith.constant 0 : index
    %c0_2 = arith.constant 0 : index
    %1 = vector.load %arg3[%c0_1, %c0_2] : memref<128x128xbf16, #tpu.memory_space<vmem>>, vector<128x128xbf16>
    %cst = arith.constant dense<0.000000e+00> : vector<16x128xf32>
    %2 = tpu.matmul %0, %1, %cst {dimension_numbers = #tpu.dot_dimension_numbers<[1], [0], [0], [1], [0, 0, 1, 1], [], []>} : vector<16x128xbf16>, vector<128x128xbf16>, vector<16x128xf32> -> vector<16x128xf32>
    %c0_3 = arith.constant 0 : index
    %c0_4 = arith.constant 0 : index
    %3 = vector.load %arg4[%c0_3, %c0_4] : memref<1x128xf32, #tpu.memory_space<vmem>>, vector<1x128xf32>
    %4 = vector.broadcast %3 : vector<1x128xf32> to vector<16x128xf32>
    %5 = arith.addf %2, %4 : vector<16x128xf32>
    %c0_5 = arith.constant 0 : index
    %c0_6 = arith.constant 0 : index
    %6 = vector.load %arg5[%c0_5, %c0_6] : memref<16x128xf32, #tpu.memory_space<vmem>>, vector<16x128xf32>
    tpu.vector_store %arg5[%c0_5, %c0_6], %5 {strides = array<i32>} : memref<16x128xf32, #tpu.memory_space<vmem>>, vector<16x128xf32>,
    return
  }
  func.func @transform_0(%arg0: i32, %arg1: i32) -> (i32, i32) {
    %c0_i32 = arith.constant 0 : i32
    %c0_i32_0 = arith.constant 0 : i32
    return %arg0, %c0_i32 : i32, i32
  }
  func.func @transform_1(%arg0: i32, %arg1: i32) -> (i32, i32) {
    %c0_i32 = arith.constant 0 : i32
    %c0_i32_0 = arith.constant 0 : i32
    return %c0_i32, %arg1 : i32, i32
  }
  func.func @transform_2(%arg0: i32, %arg1: i32) -> (i32, i32) {
    %c0_i32 = arith.constant 0 : i32
    %c0_i32_0 = arith.constant 0 : i32
    return %c0_i32, %arg1 : i32, i32
  }
  func.func @transform_3(%arg0: i32, %arg1: i32) -> (i32, i32) {
    %c0_i32 = arith.constant 0 : i32
    return %arg0, %arg1 : i32, i32
  }
}

</mosaic_0001>

<bundles_post_ra>
// kernel: linear_forward.1
= control target key start
LH: loop header
LB: loop body
LE: loop exit
PB: predicated region body
PF: predicated region fallthrough
CT: control target
= control target key end

     0   :  { %8 = vsyncpa [#allocation3], 0  ;;  %s233_s12 = smov [#allocation2]   ;;  %s282_s0 = inlined_call_operand.vmem [shape: bf16[16,128], index: 0, kind: input, shape index: {}]   ;;  %s283_s1 = inlined_call_operand.hbm [shape: bf16[128,128], index: 1, kind: input, shape index: {}]   ;;  %s284_s2 = inlined_call_operand.vmem [shape: f32[1,128], index: 2, kind: input, shape index: {}]   ;;  %s285_s3 = inlined_call_operand.vmem [shape: f32[16,128], index: 3, kind: output, shape index: {}]  }
   0x1   :  { %s16_s13 = sshll.u32 %s233_s12, 4  ;;  %s209_s16 = scalar_lea.hbm %s283_s1, 1024  ;;  %s17_s13 = int_to_ptr.vmem [resolvable:$true] %s16_s13 }
   0x2   :  { %p210_p0 = scmp.ne.s32.totalorder %s283_s1, %s209_s16  ;;  %p213_p1 = scmp.lt.u32.totalorder %s209_s16, %s283_s1 }
   0x4   :  { %p215_p2 = pnand %p213_p1, %p210_p0 }
   0x6   :  { %218 = shalt.err (!%p215_p2)
}
   0x7   :  { %s219_s21 = scalar_lea.vmem %s17_s13, 1024  ;;  %p224_p4 = scmp.lt.s32.totalorder %s17_s13, %s17_s13 }
   0x8   :  { %p220_p3 = scmp.ne.s32.totalorder %s17_s13, %s219_s21  ;;  %p225_p5 = scmp.lt.s32.totalorder %s219_s21, %s219_s21 }
   0xa   :  { %p226_p6 = por %p225_p5, %p224_p4 }
   0xc   :  { %p227_p7 = pnand %p226_p6, %p220_p3 }
   0xe   :  { %230 = shalt.err (!%p227_p7)
}
   0xf   :  { %s234_s22 = smov 64   ;;  %s235_s23 = smov 4  }
  0x10   :  { %22 = dma.hbm_to_vmem [thread:$0]  %s283_s1, 1024, %s17_s13, [#allocation3], %s234_s22, %s234_s22, %s235_s23  }
  0x11   :  { %231 = dma.done.wait [#allocation3], 1024  }
  0x12   :  { %232 = vsyncadd [#allocation3], 4294966272  ;;  %v236_v0 = vmov 0.0   ;;  %vm237_vm0 = vmmov 0   ;;  %v200_v1 = vld [vmem:[#allocation2] sm:$0xff]   ;;  %v201_v2 = vld [vmem:[#allocation2 + $0x8] sm:$0xff]  }
  0x13   :  { %175 = vmatprep.subr.bf16.mxu0 %v236_v0  ;;  %191 = vmatprep.mubr.msk.bf16.mxu0 %vm237_vm0, %v236_v0  ;;  %v202_v3 = vld [vmem:[#allocation2 + $0x10] sm:$0xff]   ;;  %v203_v4 = vld [vmem:[#allocation2 + $0x18] sm:$0xff]   ;;  %v204_v5 = vld [vmem:[#allocation2 + $0x20] sm:$0xff]  }
  0x14   :  { %176 = vmatpush3.bf16.msra.mxu0 %v200_v1  ;;  %v205_v6 = vld [vmem:[#allocation2 + $0x28] sm:$0xff]   ;;  %v206_v7 = vld [vmem:[#allocation2 + $0x30] sm:$0xff]   ;;  %v207_v8 = vld [vmem:[#allocation2 + $0x38] sm:$0xff]  }
  0x15   :  { %177 = vmatprep.subr.bf16.mxu0 %v236_v0  ;;  %v208_v9 = vld [vmem:[%s282_s0] sm:$0xff]  }
  0x16   :  { %v156_v10 = vld [vmem:[%s284_s2] ss:$0 sm:$0xff] }
  0x18   :  { %178 = vmatpush3.bf16.msra.mxu0 %v201_v2 }
  0x19   :  { %179 = vmatprep.subr.bf16.mxu0 %v236_v0 }
  0x1c   :  { %180 = vmatpush3.bf16.msra.mxu0 %v202_v3 }
  0x1d   :  { %181 = vmatprep.subr.bf16.mxu0 %v236_v0 }
  0x20   :  { %182 = vmatpush3.bf16.msra.mxu0 %v203_v4 }
  0x21   :  { %183 = vmatprep.subr.bf16.mxu0 %v236_v0 }
  0x24   :  { %184 = vmatpush3.bf16.msra.mxu0 %v204_v5 }
  0x25   :  { %185 = vmatprep.subr.bf16.mxu0 %v236_v0 }
  0x28   :  { %186 = vmatpush3.bf16.msra.mxu0 %v205_v6 }
  0x29   :  { %187 = vmatprep.subr.bf16.mxu0 %v236_v0 }
  0x2c   :  { %188 = vmatpush3.bf16.msra.mxu0 %v206_v7 }
  0x2d   :  { %189 = vmatprep.subr.bf16.mxu0 %v236_v0 }
  0x30   :  { %190 = vmatpush3.bf16.msra.mxu0 %v207_v8 }
  0x33   :  { %192 = vmatmul.mubr.bf16.vlgmr.msra.gmra.mrb[0].mxu0 %v208_v9 }
 0x106   :  { %v142_v11 = vpop.f32.mrb[0].mxu0 }
 0x107   :  { %v143_v12 = vadd.f32 %v156_v10, %v142_v11  ;;  %v193_v13 = vpop.f32.mrb[1].mxu0 }
 0x108   :  { %v145_v14 = vpop.f32.mrb[2].mxu0 }
 0x109   :  { %149 = vst [vmem:[%s285_s3] sm:$0xff] %v143_v12  ;;  %v146_v15 = vadd.f32 %v156_v10, %v145_v14  ;;  %v194_v16 = vpop.f32.mrb[3].mxu0 }
 0x10b   :  { %150 = vst [vmem:[%s285_s3 + $0x8] sm:$0xff] %v146_v15 }
 0x10c   :  { %155 = vsyncpa [#allocation3], 1 }

</bundles_post_ra>
